<compile_context>
chip_gen: v7x
topology: tpu7x:2x2x1
jax: 0.10.0
libtpu: 0.0.40
codegen_flags: <defaults>
</compile_context>

<pallas_src>
import jax
import jax.numpy as jnp
from jax.experimental import pallas as pl
from jax.experimental.pallas import tpu as pltpu


_EMB = 64         # seg_emb / lay_emb width
_MAX_TILE = 2048  # max batch lanes per grid step (multiple of 128)


def _round_up(x, m):
    return ((x + m - 1) // m) * m


def _cdiv(a, b):
    return -(-a // b)


def _assign_weight_kernel(scal_ref, seg_ref, out_ref):
    # scal_ref (SMEM, f32[4]): [c_seg, d_small, d_mid, d_large] (folded in the
    # wrapper, grid-invariant).  seg_ref: (1, tile) lane-dense segout row.
    # out_ref: (3, tile) lane-dense output (rows = small / mid / large).
    row = jax.lax.broadcasted_iota(jnp.int32, out_ref.shape, 0)
    d_plane = jnp.where(row == 0, scal_ref[1],
                        jnp.where(row == 1, scal_ref[2], scal_ref[3]))
    # out[k, b] = segout[b] * c_seg + d_k     (pure VPU: one vmul + one vadd)
    out_ref[...] = seg_ref[...] * scal_ref[0] + d_plane


def assign_weight(segout_shape, small_layer, mid_layer, large_layer, params,
                  lane_dense_output=False):
    """segout_shape: (B, 1) float; layer ids are Python/JAX scalars.

    params = (w_seg(1,64), b_seg(1,64), w_lay(1,64), b_lay(1,64),
              w_out(128,1), b_out(1,1))  — Linear weights stored transposed.

    Returns (B, 3) like the PyTorch module. Pass lane_dense_output=True to get
    the lane-dense (3, B) layout and skip the final transpose.
    """
    w_seg, b_seg, w_lay, b_lay, w_out, b_out = params
    B = segout_shape.shape[0]

    # --- O(1) grid-invariant parameter collapse (wrapper-side, not per-element) ---
    w_out_lo = w_out[:_EMB, 0].astype(jnp.float32)
    w_out_hi = w_out[_EMB:, 0].astype(jnp.float32)
    c_seg = jnp.dot(w_seg.reshape(-1).astype(jnp.float32), w_out_lo)
    c_lay = jnp.dot(w_lay.reshape(-1).astype(jnp.float32), w_out_hi)
    c_bias = (jnp.dot(b_seg.reshape(-1).astype(jnp.float32), w_out_lo)
              + jnp.dot(b_lay.reshape(-1).astype(jnp.float32), w_out_hi)
              + jnp.asarray(b_out, jnp.float32).reshape(()))
    layers = jnp.asarray([small_layer, mid_layer, large_layer], jnp.float32)
    # SMEM scalars: [c_seg, d_small, d_mid, d_large]
    scalars = jnp.concatenate([c_seg.reshape(1), c_lay * layers + c_bias])

    # --- lane-dense batch layout + adaptive tiling ---
    seg_row = segout_shape.astype(jnp.float32).reshape(1, B)  # free reshape (contiguous)
    if B < 128:
        # Tiny batch: launch-bound; one minimal 128-lane tile (cheap pad).
        n_lanes = 128
        seg_row = jnp.pad(seg_row, ((0, 0), (0, n_lanes - B)))
        tile = 128
    else:
        # No padding: ragged last tile handled by Pallas masked edge stores.
        n_lanes = B
        b_floor = (B // 128) * 128
        n_tiles = _cdiv(b_floor, _MAX_TILE)
        tile = _round_up(_cdiv(b_floor, n_tiles), 128)  # balanced, <= _MAX_TILE, <= B

    grid = (_cdiv(n_lanes, tile),)

    out = pl.pallas_call(
        _assign_weight_kernel,
        out_shape=jax.ShapeDtypeStruct((3, n_lanes), jnp.float32),
        grid=grid,
        in_specs=[
            pl.BlockSpec(memory_space=pltpu.MemorySpace.SMEM),  # folded scalars
            pl.BlockSpec((1, tile), lambda i: (0, i)),          # segout, lane-dense
        ],
        out_specs=pl.BlockSpec((3, tile), lambda i: (0, i)),    # lane-dense output
        compiler_params=pltpu.CompilerParams(
            dimension_semantics=("parallel",)),
    )(scalars, seg_row)

    if n_lanes != B:
        out = out[:, :B]
    if lane_dense_output:
        return out           # (3, B), batch on lanes (preferred layout for TPU consumers)
    return out.T             # (B, 3), matches the PyTorch module's return layout


def _reference(segout_shape, small, mid, large, params):
    # Pure-JAX mirror of the PyTorch forward.
    w_seg, b_seg, w_lay, b_lay, w_out, b_out = params
    B = segout_shape.shape[0]
    seg_emb = segout_shape @ w_seg + b_seg                              # (B, 64)
    cols = []
    for layer_val in (small, mid, large):
        lay = jnp.full((B, 1), layer_val, jnp.float32) @ w_lay + b_lay  # (B, 64)
        cat = jnp.concatenate([seg_emb, lay], axis=1)                   # (B, 128)
        cols.append(cat @ w_out + b_out)                                # (B, 1)
    return jnp.concatenate(cols, axis=1)                                # (B, 3)


if __name__ == "__main__":
    key = jax.random.PRNGKey(0)
    ks = jax.random.split(key, 7)

    # Deterministic synthetic parameters (shapes from the module's __init__;
    # Linear weights stored transposed so forward is x @ W_t + b).
    w_seg = jax.random.normal(ks[1], (1, 64), jnp.float32) * 0.5    # seg_emb.weight.T
    b_seg = jax.random.normal(ks[2], (1, 64), jnp.float32) * 0.1    # seg_emb.bias
    w_lay = jax.random.normal(ks[3], (1, 64), jnp.float32) * 0.5    # lay_emb.weight.T
    b_lay = jax.random.normal(ks[4], (1, 64), jnp.float32) * 0.1    # lay_emb.bias
    w_out = jax.random.normal(ks[5], (128, 1), jnp.float32) * 0.1   # out.weight.T
    b_out = jax.random.normal(ks[6], (1, 1), jnp.float32) * 0.1     # out.bias
    params = (w_seg, b_seg, w_lay, b_lay, w_out, b_out)
    small, mid, large = 1.0, 2.0, 3.0

    ok = True
    # B = 2 (module's typical tiny batch) and B = 300 (exercises the
    # un-padded ragged-last-tile path).
    for B in (2, 300):
        segout_shape = jax.random.normal(ks[0], (B, 1), jnp.float32)
        out = jax.block_until_ready(
            assign_weight(segout_shape, small, mid, large, params))
        ref = _reference(segout_shape, small, mid, large, params)
        ok &= (out.shape == (B, 3)) and (out.dtype == jnp.float32)
        ok &= bool(jnp.allclose(out, ref, atol=1e-4, rtol=1e-4))

    assert ok
    print("KERNEL_OK")
</pallas_src>

<mosaic_0001>
module attributes {stable_mosaic.version = 11 : i64} {
  func.func @_assign_weight_kernel(%arg0: i32, %arg1: memref<4xf32, #tpu.memory_space<smem>>, %arg2: memref<1x128xf32, #tpu.memory_space<vmem>>, %arg3: memref<3x128xf32, #tpu.memory_space<vmem>>) attributes {dimension_semantics = [#tpu.dimension_semantics<parallel>], iteration_bounds = array<i64: 1>, scalar_prefetch = 0 : i64, scratch_operands = 0 : i64, tpu.core_type = #tpu.core_type<tc>, window_params = [{transform_indices = @transform_0, window_bounds = array<i64: 4>}, {transform_indices = @transform_1, window_bounds = array<i64: 1, 128>}, {transform_indices = @transform_2, window_bounds = array<i64: 3, 128>}]} {
    %0 = tpu.iota {dimensions = array<i32: 0>} : vector<3x128xi32>
    %c0_i32 = arith.constant 0 : i32
    %1 = vector.broadcast %c0_i32 : i32 to vector<3x128xi32>
    %2 = arith.cmpi eq, %0, %1 : vector<3x128xi32>
    %c1 = arith.constant 1 : index
    %3 = memref.load %arg1[%c1] : memref<4xf32, #tpu.memory_space<smem>>
    %c1_i32 = arith.constant 1 : i32
    %4 = vector.broadcast %c1_i32 : i32 to vector<3x128xi32>
    %5 = arith.cmpi eq, %0, %4 : vector<3x128xi32>
    %c2 = arith.constant 2 : index
    %6 = memref.load %arg1[%c2] : memref<4xf32, #tpu.memory_space<smem>>
    %c3 = arith.constant 3 : index
    %7 = memref.load %arg1[%c3] : memref<4xf32, #tpu.memory_space<smem>>
    %8 = vector.broadcast %6 : f32 to vector<3x128xf32>
    %9 = vector.broadcast %7 : f32 to vector<3x128xf32>
    %10 = arith.select %5, %8, %9 : vector<3x128xi1>, vector<3x128xf32>
    %11 = vector.broadcast %3 : f32 to vector<3x128xf32>
    %12 = arith.select %2, %11, %10 : vector<3x128xi1>, vector<3x128xf32>
    %c0 = arith.constant 0 : index
    %c0_0 = arith.constant 0 : index
    %13 = vector.load %arg2[%c0, %c0_0] : memref<1x128xf32, #tpu.memory_space<vmem>>, vector<1x128xf32>
    %c0_1 = arith.constant 0 : index
    %14 = memref.load %arg1[%c0_1] : memref<4xf32, #tpu.memory_space<smem>>
    %15 = vector.broadcast %14 : f32 to vector<1x128xf32>
    %16 = arith.mulf %13, %15 : vector<1x128xf32>
    %17 = vector.broadcast %16 : vector<1x128xf32> to vector<3x128xf32>
    %18 = arith.addf %17, %12 : vector<3x128xf32>
    %c0_2 = arith.constant 0 : index
    %c0_3 = arith.constant 0 : index
    %19 = vector.load %arg3[%c0_2, %c0_3] : memref<3x128xf32, #tpu.memory_space<vmem>>, vector<3x128xf32>
    tpu.vector_store %arg3[%c0_2, %c0_3], %18 {strides = array<i32>} : memref<3x128xf32, #tpu.memory_space<vmem>>, vector<3x128xf32>,
    return
  }
  func.func @transform_0(%arg0: i32) -> i32 {
    %c0_i32 = arith.constant 0 : i32
    %c0_i32_0 = arith.constant 0 : i32
    return %c0_i32 : i32
  }
  func.func @transform_1(%arg0: i32) -> (i32, i32) {
    %c0_i32 = arith.constant 0 : i32
    %c0_i32_0 = arith.constant 0 : i32
    return %c0_i32, %arg0 : i32, i32
  }
  func.func @transform_2(%arg0: i32) -> (i32, i32) {
    %c0_i32 = arith.constant 0 : i32
    %c0_i32_0 = arith.constant 0 : i32
    return %c0_i32, %arg0 : i32, i32
  }
}

</mosaic_0001>

<bundles_post_ra>
// kernel: tpu_custom_call.1
= control target key start
LH: loop header
LB: loop body
LE: loop exit
PB: predicated region body
PF: predicated region fallthrough
CT: control target
= control target key end

     0   :  { %7 = vsyncpa [#allocation4], 0  ;;  %s147_s0 = inlined_call_operand.hbm [shape: f32[4], index: 0, kind: input, shape index: {}]   ;;  %s148_s1 = inlined_call_operand.vmem [shape: f32[1,128], index: 1, kind: input, shape index: {}]   ;;  %s149_s2 = inlined_call_operand.hbm [shape: f32[3,128], index: 2, kind: output, shape index: {}]  }
   0x1   :  { %8 = vsyncpa [#allocation3], 0  ;;  %s67_s11 = scalar_lea.hbm %s147_s0, 16 }
   0x2   :  { %p68_p0 = scmp.ne.s32.totalorder %s147_s0, %s67_s11  ;;  %p71_p1 = scmp.lt.u32.totalorder %s67_s11, %s147_s0 }
   0x4   :  { %p73_p2 = pnand %p71_p1, %p68_p0 }
   0x6   :  { %76 = shalt.err (!%p73_p2)
}
   0x7   :  { %s103_s16 = smov [#allocation2]  }
   0x8   :  { %16 = dma.hbm_to_smem %s147_s0, 16, %s103_s16, [#allocation4]  }
   0x9   :  { %99 = dma.done.wait [#allocation4], 16  }
   0xa   :  { %100 = vsyncadd [#allocation4], 4294967280 }
   0xb   :  { %22 = sfence }
   0xc   :  { %v23_v0 = vlaneseq  ;;  %s62_s19 = sld [smem:[#allocation2 + $0x1]]  ;;  %s63_s20 = sld [smem:[#allocation2 + $0x2]]  ;;  %v35_v2 = vld [vmem:[%s148_s1] sm:$0x1] }
   0xd   :  { %s64_s21 = sld [smem:[#allocation2 + $0x3]]  ;;  %s36_s22 = sld [smem:[#allocation2]] }
   0xe   :  { %v24_v1 = vshrl.u32 %v23_v0, 7  ;;  %s104_s0 = smov [#allocation5]  }
   0xf   :  { %s53_s25 = sshll.u32 %s104_s0, 4  ;;  %s54_s25 = int_to_ptr.vmem [resolvable:$true] %s53_s25 }
  0x10   :  { %vm27_vm0 = vcmp.eq.s32.totalorder %v24_v1, 1  ;;  %vm25_vm1 = vcmp.eq.s32.totalorder %v24_v1, 0  ;;  %v42_v5 = vsub.s32 0, %v24_v1  ;;  %s77_s26 = scalar_lea.vmem %s54_s25, 64  ;;  %p82_p4 = scmp.lt.s32.totalorder %s54_s25, %s54_s25 }
  0x11   :  { %p78_p3 = scmp.ne.s32.totalorder %s54_s25, %s77_s26  ;;  %p83_p5 = scmp.lt.s32.totalorder %s77_s26, %s77_s26 }
  0x12   :  { %v30_v3 = vstv %s63_s20  ;;  %v33_v4 = vstv %s62_s19 }
  0x13   :  { %v31_v6 = vstv %s64_s21  ;;  %v37_v7 = vstv %s36_s22  ;;  %p84_p6 = por %p83_p5, %p82_p4 }
  0x14   :  { %v32_v8 = vsel %vm27_vm0, %v30_v3, %v31_v6  ;;  %v38_v9 = vmul.f32 %v37_v7, %v35_v2 }
  0x15   :  { %v34_v10 = vsel %vm25_vm1, %v33_v4, %v32_v8  ;;  %p85_p7 = pnand %p84_p6, %p78_p3 }
  0x16   :  { %v43_v11 = vrot.slane %v38_v9, %v42_v5 }
  0x18   :  { %v45_v12 = vadd.f32 %v43_v11, %v34_v10 }
  0x1a   :  { %46 = vst [vmem:[#allocation5] sm:$0x7] %v45_v12 }
  0x1b   :  { %88 = shalt.err (!%p85_p7)
}
  0x1c   :  { %s89_s28 = scalar_lea.hbm %s149_s2, 64 }
  0x1d   :  { %p90_p8 = scmp.ne.s32.totalorder %s149_s2, %s89_s28  ;;  %p93_p9 = scmp.lt.u32.totalorder %s89_s28, %s149_s2 }
  0x1f   :  { %p95_p10 = pnand %p93_p9, %p90_p8 }
  0x21   :  { %98 = shalt.err (!%p95_p10)
}
  0x22   :  { %56 = dma.vmem_to_hbm [thread:$0]  %s54_s25, 64, %s149_s2, [#allocation3]  }
  0x23   :  { %101 = dma.done.wait [#allocation3], 64  }
  0x24   :  { %102 = vsyncadd [#allocation3], 4294967232 }
  0x25   :  { %60 = vsyncpa [#allocation3], 1 }
  0x26   :  { %61 = vsyncpa [#allocation4], 1 }

</bundles_post_ra>
